<compile_context>
chip_gen: v6e
topology: v6e:2x2x1
jax: 0.10.0
libtpu: 0.0.40
codegen_flags: <defaults>
</compile_context>

<pallas_src>
import numpy as np
import jax
import jax.numpy as jnp
from jax.experimental import pallas as pl
from jax.experimental.pallas import tpu as pltpu


# ----------------------------------------------------------------------------
# Pallas kernel: 1x1 Conv1d in NCL layout (T on the lane axis) plus a
# per-(batch, channel) conditioning broadcast over T.
#
#   o[b, :, t0:t0+TT] = wc @ x[b, :, t0:t0+TT] + cond[b, :, 0:1]
# ----------------------------------------------------------------------------
def _xconv_kernel(cond_ref, wc_ref, x_ref, o_ref):
    # cond_ref : VMEM (1, wn_ch, 1)      f32  conv bias + swish(fc_t2(swish(fc_t1(emb))))
    # wc_ref   : VMEM (wn_ch, num_mels)  f32  1x1 conv weight (out, in), grid-resident
    # x_ref    : VMEM (1, num_mels, TT)  f32  mel tile, T on the lane axis
    # o_ref    : VMEM (1, wn_ch, TT)     bf16 output tile, T on the lane axis
    y = jnp.dot(wc_ref[...].astype(jnp.bfloat16),
                x_ref[0].astype(jnp.bfloat16),           # in-kernel cast: free on VPU
                preferred_element_type=jnp.float32)      # (wn_ch, TT) f32 accumulate
    o_ref[0] = (y + cond_ref[0]).astype(o_ref.dtype)


def _pick_tile_t(T, *, cap_lanes=16384, floor_lanes=512, target_tiles=4):
    """T tile in lanes (multiple of 128).

    Large enough to amortize the ~0.35 us per-grid-step overhead (up to
    `cap_lanes`: 16384 lanes -> ~4 MiB double-buffered at these channel counts,
    far under the 32 MiB scoped-VMEM default on every generation), small enough
    that the grid keeps >= 2 T-tiles (hard, so v7x megacore gets work) and
    ideally ~`target_tiles`, but never shrunk below `floor_lanes` just to get
    extra tiles.
    """
    chunks = -(-T // 128)                     # 128-lane chunks (T rounded up)
    cap = cap_lanes // 128
    floor = max(floor_lanes // 128, 1)
    tt = -(-chunks // target_tiles)           # aim for ~target_tiles tiles
    tt = max(tt, min(floor, chunks))          # don't shrink below the floor
    tt = min(tt, cap)                         # VMEM / pipelining cap
    tt = min(tt, max(-(-chunks // 2), 1))     # hard guarantee: >= 2 tiles if possible
    return tt * 128


def _time_conditioning(ts, params):
    """step_embed + fc_t1 + swish + fc_t2 + swish, in plain JAX (hoisted).

    Returns (B, wn_ch) float32. This is M=1 matmul work — putting it in the
    per-tile Pallas body would just re-run MXU-padding + EUP work every tile.
    """
    ts_ch = params["w1"].shape[0]
    assert ts_ch % 2 == 0 and ts_ch >= 4, "ts_channels must be an even number >= 4"
    half = ts_ch // 2
    f = np.exp(np.arange(half, dtype=np.float32) * -(np.log(10000.0) / (half - 1)))
    arg = ts.astype(jnp.float32) * jnp.asarray(f)[None, :]               # (B, half)
    emb = jnp.concatenate([jnp.sin(arg), jnp.cos(arg)], axis=1)          # (B, ts_ch)
    h1 = emb @ params["w1"] + params["b1"]
    h1 = h1 * jax.nn.sigmoid(h1)
    h2 = h1 @ params["w2"] + params["b2"]
    h2 = h2 * jax.nn.sigmoid(h2)                                         # (B, wn_ch)
    return h2


def x_conv_plus_ts(x_t_ncl, ts, params, out_dtype=jnp.bfloat16):
    """x_conv(x_t) + swish(fc_t2(swish(fc_t1(step_embed(ts)))))[..., None]  (NCL)."""
    B, num_mels, T = x_t_ncl.shape
    wn_ch = params["wc"].shape[0]

    # Per-batch conditioning vector, with the conv bias folded in.
    h2 = _time_conditioning(ts, params)                                  # (B, wn_ch)
    cond = (h2 + params["bc"])[:, :, None].astype(jnp.float32)           # (B, wn_ch, 1)

    tt = _pick_tile_t(T)
    n_t = pl.cdiv(T, tt)       # ragged T handled by Pallas edge clipping

    out = pl.pallas_call(
        _xconv_kernel,
        out_shape=jax.ShapeDtypeStruct((B, wn_ch, T), out_dtype),
        grid=(B, n_t),
        in_specs=[
            pl.BlockSpec((1, wn_ch, 1), lambda b, t: (b, 0, 0)),         # cond
            pl.BlockSpec((wn_ch, num_mels), lambda b, t: (0, 0)),        # wc (resident)
            pl.BlockSpec((1, num_mels, tt), lambda b, t: (b, 0, t)),     # x tile (f32)
        ],
        out_specs=pl.BlockSpec((1, wn_ch, tt), lambda b, t: (b, 0, t)),
        compiler_params=pltpu.CompilerParams(
            dimension_semantics=("parallel", "parallel")),               # megacore on v7x
    )(cond, params["wc"], x_t_ncl)
    return out                                                            # (B, wn_ch, T)


def model_forward_eval(x_t, ts, c, ref, params, cfg_s):
    """Eval-mode forward of Model (classifier-free-guidance path). B must be 1."""
    assert c.shape[0] == 1
    x_wn = x_conv_plus_ts(x_t, ts, params)                               # (1, wn_ch, T)

    # TODO(synk): WNBlock / UnitRefEncoder are not defined in the source module;
    # WN is treated as identity on x_t. With identical conditioned/unconditioned
    # branches the eval-path CFG combine (1+s)*eps0 - s*eps1 == eps0, so the
    # 2x-batch expand/concat and the extra elementwise pass are skipped entirely.
    del c, ref, cfg_s
    return x_wn


def init_params(key, *, ts_channels, wn_channels, num_mels, ure_channels):
    """Deterministic synthetic weights. Linear weights stored as (in, out) so the
    hoisted conditioning path multiplies on the right; the conv weight is stored
    PyTorch-style as (out_ch, in_ch) so the kernel multiplies on the left.
    weight_norm at init is the identity reparameterization (g = ||v||)."""
    ks = jax.random.split(key, 8)
    s = 0.05
    return {
        "w1": (jax.random.normal(ks[0], (ts_channels, ts_channels)) * s).astype(jnp.float32),
        "b1": (jax.random.normal(ks[1], (1, ts_channels)) * s).astype(jnp.float32),
        "w2": (jax.random.normal(ks[2], (ts_channels, wn_channels)) * s).astype(jnp.float32),
        "b2": (jax.random.normal(ks[3], (1, wn_channels)) * s).astype(jnp.float32),
        "wc": (jax.random.normal(ks[4], (wn_channels, num_mels)) * s).astype(jnp.float32),
        "bc": (jax.random.normal(ks[5], (1, wn_channels)) * s).astype(jnp.float32),
        "cfg": jax.random.normal(ks[6], (1, ure_channels, 1)).astype(jnp.float32),
    }


def _reference_x_conv_plus_ts(x_t_ncl, ts, params):
    """Pure-JAX f32 reference for the Pallas-accelerated piece."""
    h2 = _time_conditioning(ts, params)                                   # (B, wn_ch)
    y = jnp.einsum("oi,bit->bot", params["wc"], x_t_ncl.astype(jnp.float32))
    return y + (h2 + params["bc"])[:, :, None]


if __name__ == "__main__":
    # Small shapes consistent with the module's forward (eval path: B == 1).
    B = 1
    num_mels = 16
    ts_channels = 32
    wn_channels = 32
    ure_channels = 8
    cfg_s = 1.0

    key = jax.random.PRNGKey(0)
    kp, kx, kt, kc, kr = jax.random.split(key, 5)

    params = init_params(kp, ts_channels=ts_channels, wn_channels=wn_channels,
                         num_mels=num_mels, ure_channels=ure_channels)

    # T = 384: multiple of 128 but not of the chosen tile -> exercises the cdiv
    # grid and the >=2-tiles guarantee.
    T = 384
    x_t = jax.random.normal(kx, (B, num_mels, T), jnp.float32)            # NCL, like PyTorch
    ts = jax.random.uniform(kt, (B, 1), jnp.float32) * 100.0              # diffusion step
    c = jax.random.normal(kc, (B, ure_channels, T), jnp.float32)
    ref = jax.random.normal(kr, (B, ure_channels, T), jnp.float32)

    eps = model_forward_eval(x_t, ts, c, ref, params, cfg_s)
    eps = jax.block_until_ready(eps)
    assert eps.shape == (B, wn_channels, T), eps.shape
    assert bool(jnp.all(jnp.isfinite(eps.astype(jnp.float32))))

    # Correctness vs pure-JAX f32 reference (bf16 matmul + bf16 output -> loose tol).
    ref_out = _reference_x_conv_plus_ts(x_t, ts, params)
    got = x_conv_plus_ts(x_t, ts, params).astype(jnp.float32)
    max_err = float(jnp.max(jnp.abs(got - ref_out)))
    assert max_err < 3e-2, f"max abs err {max_err}"

    # Ragged-T path (T not a multiple of 128) -> Pallas edge clipping, masked
    # stores only on the single edge tile.
    T2 = 200
    x2 = jax.random.normal(kx, (B, num_mels, T2), jnp.float32)
    ref_out2 = _reference_x_conv_plus_ts(x2, ts, params)
    got2 = jax.block_until_ready(x_conv_plus_ts(x2, ts, params).astype(jnp.float32))
    max_err2 = float(jnp.max(jnp.abs(got2 - ref_out2)))
    assert max_err2 < 3e-2, f"ragged-T max abs err {max_err2}"

    print("KERNEL_OK")
</pallas_src>

<mosaic_0001>
module attributes {stable_mosaic.version = 11 : i64} {
  func.func @_xconv_kernel(%arg0: i32, %arg1: i32, %arg2: memref<1x32x1xf32, #tpu.memory_space<vmem>>, %arg3: memref<32x16xf32, #tpu.memory_space<vmem>>, %arg4: memref<1x16x256xf32, #tpu.memory_space<vmem>>, %arg5: memref<1x32x256xbf16, #tpu.memory_space<vmem>>) attributes {dimension_semantics = [#tpu.dimension_semantics<parallel>, #tpu.dimension_semantics<parallel>], iteration_bounds = array<i64: 1, 2>, scalar_prefetch = 0 : i64, scratch_operands = 0 : i64, tpu.core_type = #tpu.core_type<tc>, window_params = [{transform_indices = @transform_0, window_bounds = array<i64: 1, 32, 1>}, {pipeline_mode = #tpu.pipeline_mode<synchronous>, transform_indices = @transform_1, window_bounds = array<i64: 32, 16>}, {transform_indices = @transform_2, window_bounds = array<i64: 1, 16, 256>}, {transform_indices = @transform_3, window_bounds = array<i64: 1, 32, 256>}]} {
    %c0 = arith.constant 0 : index
    %c0_0 = arith.constant 0 : index
    %0 = vector.load %arg3[%c0, %c0_0] : memref<32x16xf32, #tpu.memory_space<vmem>>, vector<32x16xf32>
    %1 = arith.truncf %0 : vector<32x16xf32> to vector<32x16xbf16>
    %c0_1 = arith.constant 0 : index
    %c0_2 = arith.constant 0 : index
    %c0_3 = arith.constant 0 : index
    %2 = vector.load %arg4[%c0_1, %c0_2, %c0_3] : memref<1x16x256xf32, #tpu.memory_space<vmem>>, vector<1x16x256xf32>
    %3 = vector.shape_cast %2 : vector<1x16x256xf32> to vector<16x256xf32>
    %4 = arith.truncf %3 : vector<16x256xf32> to vector<16x256xbf16>
    %cst = arith.constant dense<0.000000e+00> : vector<32x256xf32>
    %5 = tpu.matmul %1, %4, %cst {dimension_numbers = #tpu.dot_dimension_numbers<[1], [0], [0], [1], [0, 0, 1, 1], [], []>} : vector<32x16xbf16>, vector<16x256xbf16>, vector<32x256xf32> -> vector<32x256xf32>
    %c0_4 = arith.constant 0 : index
    %c0_5 = arith.constant 0 : index
    %c0_6 = arith.constant 0 : index
    %6 = vector.load %arg2[%c0_4, %c0_5, %c0_6] : memref<1x32x1xf32, #tpu.memory_space<vmem>>, vector<1x32x1xf32>
    %7 = vector.shape_cast %6 : vector<1x32x1xf32> to vector<32x1xf32>
    %8 = vector.broadcast %7 : vector<32x1xf32> to vector<32x256xf32>
    %9 = arith.addf %5, %8 : vector<32x256xf32>
    %10 = arith.truncf %9 : vector<32x256xf32> to vector<32x256xbf16>
    %c0_7 = arith.constant 0 : index
    %c0_8 = arith.constant 0 : index
    %c0_9 = arith.constant 0 : index
    %11 = vector.load %arg5[%c0_7, %c0_8, %c0_9] : memref<1x32x256xbf16, #tpu.memory_space<vmem>>, vector<1x32x256xbf16>
    %12 = vector.shape_cast %11 : vector<1x32x256xbf16> to vector<32x256xbf16>
    %13 = vector.shape_cast %10 : vector<32x256xbf16> to vector<1x32x256xbf16>
    tpu.vector_store %arg5[%c0_7, %c0_8, %c0_9], %13 {strides = array<i32>} : memref<1x32x256xbf16, #tpu.memory_space<vmem>>, vector<1x32x256xbf16>,
    return
  }
  func.func @transform_0(%arg0: i32, %arg1: i32) -> (i32, i32, i32) {
    %c0_i32 = arith.constant 0 : i32
    %c0_i32_0 = arith.constant 0 : i32
    %c0_i32_1 = arith.constant 0 : i32
    return %arg0, %c0_i32, %c0_i32_0 : i32, i32, i32
  }
  func.func @transform_1(%arg0: i32, %arg1: i32) -> (i32, i32) {
    %c0_i32 = arith.constant 0 : i32
    %c0_i32_0 = arith.constant 0 : i32
    %c0_i32_1 = arith.constant 0 : i32
    return %c0_i32, %c0_i32_0 : i32, i32
  }
  func.func @transform_2(%arg0: i32, %arg1: i32) -> (i32, i32, i32) {
    %c0_i32 = arith.constant 0 : i32
    %c0_i32_0 = arith.constant 0 : i32
    return %arg0, %c0_i32, %arg1 : i32, i32, i32
  }
  func.func @transform_3(%arg0: i32, %arg1: i32) -> (i32, i32, i32) {
    %c0_i32 = arith.constant 0 : i32
    %c0_i32_0 = arith.constant 0 : i32
    return %arg0, %c0_i32, %arg1 : i32, i32, i32
  }
}

</mosaic_0001>

<bundles_post_ra>
// kernel: tpu_custom_call.1
= control target key start
LH: loop header
LB: loop body
LE: loop exit
PB: predicated region body
PF: predicated region fallthrough
CT: control target
= control target key end

     0   :  { %s1645_s0 = inlined_call_operand.vmem [shape: f32[1,32,1], index: 0, kind: input, shape index: {}]   ;;  %s1646_s1 = inlined_call_operand.vmem [shape: f32[32,16], index: 1, kind: input, shape index: {}]   ;;  %s1647_s2 = inlined_call_operand.vmem [shape: f32[1,16,384], index: 2, kind: input, shape index: {}]   ;;  %s1648_s3 = inlined_call_operand.hbm [shape: bf16[1,32,384], index: 3, kind: output, shape index: {}]  }
   0x1   :  { %1649 = sst [smem:[#allocation6_spill]] %s1647_s2 }
   0x2   :  { %8 = vsyncpa [#allocation4], 0 }
   0x3   :  { %10 = vsyncpa [#allocation4 + $0x1], 0  ;;  %s1419_s12 = smov 0   ;;  %s1421_s13 = smov 0  }
   0x4   :  { %s1423_s14 = smov 0   ;;  %s1425_s15 = smov 0  }
   0x5   :  { %s1427_s16 = smov 0   ;;  %s1429_s17 = smov 0  }
   0x6 LB: > { %s963_s18 = sadd.s32 4294967295, %s1359_s17   ;;  %s964_s19 = sadd.s32 4294967294, %s1359_s17   ;;  %s1359_s17 = sphi %s1429_s17, %s16_s17   ;;  %s1355_s16 = sphi %s1427_s16, %s1657_s16   ;;  %s1351_s15 = sphi %s1425_s15, %s1656_s15   ;;  %s1347_s14 = sphi %s1423_s14, %s1655_s14   ;;  %s1343_s13 = sphi %s1421_s13, %s1654_s13   ;;  %s1339_s12 = sphi %s1419_s12, %s1653_s12  }
   0x7   : > { %s25_s20 = sadd.s32 1, %s1355_s16  ;;  %s84_s21 = sadd.s32 1, %s1347_s14 }
   0x8   : > { %p26_p0 = scmp.ge.s32.totalorder %s25_s20, 2  ;;  %p91_p1 = scmp.ne.s32.totalorder %s1347_s14, %s1343_s13 }
   0x9   : > { %p92_p2 = scmp.eq.s32.totalorder %s1359_s17, 0  ;;  %p123_p3 = scmp.eq.s32.totalorder %s963_s18, 1 }
   0xa   : > { %s1659_s20 = smov (%p26_p0, %s25_s20), 0  ;;  %p128_p6 = scmp.ne.s32.totalorder %s1343_s13, %s1339_s12 }
   0xb   : > { %p93_p4 = por %p92_p2, %p91_p1  ;;  %p1458_p5 = por %p123_p3, %p91_p1 }
   0xc   : > { %s80_s23 = ssub.s32 %s1355_s16, %s1659_s20  ;;  %p129_p8 = scmp.eq.s32.totalorder %s964_s19, 1 }
   0xd   : > { %p82_p7 = scmp.eq.s32.totalorder %s80_s23, 0  ;;  %p967_p10 = scmp.ge.s32.totalorder %s1359_s17, 2 }
   0xe   : > { %p1469_p9 = por %p129_p8, %p128_p6 }
   0xf   : > { %s1467_s24 = scalar_select %p82_p7, %s1347_s14, %s84_s21  }
  0x10   : > { %156 = sbr.rel (%p967_p10) target bundleno = 91 (0x5b), region = 24 }
  0x15   : > { %159 = sbr.rel (!%p93_p4) target bundleno = 91 (0x5b), region = 28  ;;  %s161_s26 = sand.u32 (%p93_p4), 1, %s1347_s14  }
  0x16   : > { %s969_s27 = sshll.u32 (%p93_p4), %s1355_s16, 1  ;;  %s968_s28 = sshll.u32 (%p93_p4), %s161_s26, 5 }
  0x17   : > { %s165_s29 = ssub.s32 (%p93_p4), 3, %s969_s27  ;;  %s1016_s30 = sshll.u32 (%p93_p4), %s1355_s16, 4 }
  0x18   : > { %p166_p11 = scmp.lt.s32.totalorder (%p93_p4), %s165_s29, 2  ;;  %s1652_s2 = sld [smem:[#allocation6_spill]] (%p93_p4) }
  0x19   : > { %s1486_s9 = scalar_lea.vmem (%p93_p4), [#allocation2], %s968_s28  }
  0x1a   : > { %s1661_s29 = smov (!%p166_p11, %s165_s29), 2 }
  0x1b   : > { %s970_s7 = sshll.u32 %s1661_s29, 8  ;;  %s1484_s8 = sshll.u32 %s1661_s29, 3 }
  0x1c   : > { %p974_p12 = scmp.eq.s32.totalorder %s970_s7, 0 }
  0x1d   : > { %p178_p13 = scmp.lt.u32.totalorder (!%p974_p12), %s1484_s8, 8 }
  0x1e   : > { %s1482_s6 = scalar_lea.vmem %s1652_s2, %s1016_s30   ;;  %177 = sbr.rel (%p974_p12) target bundleno = 91 (0x5b), region = 32 }
  0x23   : > { %181 = sbr.rel (%p178_p13) target bundleno = 82 (0x52), region = 36  ;;  %s1490_s10 = sand.u32 (!%p178_p13), 7, %s1484_s8  }
  0x24   : > { %p200_p0 = scmp.eq.s32.totalorder (!%p178_p13), %s1490_s10, 0  ;;  %p975_p1 = scmp.ne.s32.totalorder (!%p178_p13), %s1490_s10, 0 }
  0x28   : > { %203 = sbr.rel (%p975_p1) target bundleno = 58 (0x3a), region = 51  ;;  %s204_s11 = sshrl.u32 (!%p975_p1), %s1484_s8, 3 }
  0x29   : > { %s205_s18 = sshrl.u32 (!%p975_p1), %s204_s11, 5  ;;  %s1495_s19 = sand.u32 (!%p975_p1), 31, %s204_s11  }
  0x2a   : > { %s1017_s21 = sshll.u32 (!%p975_p1), %s205_s18, 12  ;;  %p982_p2 = scmp.le.s32.totalorder (!%p975_p1), %s1495_s19, 0 }
  0x2b   : > { %s356_s23 = sshra.s32 (!%p975_p1), %s1017_s21, 4 }
  0x2c   : > { %s1498_s26 = scalar_lea.vmem (!%p975_p1), %s1482_s6, %s356_s23   ;;  %s360_s27 = scalar_lea.vmem (!%p975_p1), %s1486_s9, %s356_s23 [#allocation2]  }
  0x2d   : > { %888 = sbr.rel (%p982_p2) target bundleno = 58 (0x3a), region = 164  ;;  %s1361_s28 = smov (!%p982_p2), %s360_s27  }
  0x2e   : > { %s1365_s29 = smov (!%p982_p2), %s1498_s26   ;;  %s1369_s30 = smov (!%p982_p2), 0  }
  0x2f   : > { %s1373_s4 = smov (!%p982_p2), 0  }
  0x32 LB: >> { %v372_v0 = vld [vmem:[%s1367_s29] sm:$0xff]  ;;  %v374_v1 = vld [vmem:[%s1367_s29 + $0x18] sm:$0xff]  ;;  %s376_s5 = sadd.s32 1, %s1371_s30  ;;  %s366_s4 = sadd.s32 1, %s1375_s4   ;;  %s1375_s4 = sphi %s1373_s4, %s366_s4   ;;  %s1371_s30 = sphi %s1369_s30, %s1370_s30   ;;  %s1367_s29 = sphi %s1365_s29, %s381_s29   ;;  %s1363_s28 = sphi %s1361_s28, %s382_s28  }
  0x33   : >> { %373 = vst [vmem:[%s1363_s28] sm:$0xff] %v372_v0  ;;  %375 = vst [vmem:[%s1363_s28 + $0x10] sm:$0xff] %v374_v1  ;;  %p377_p3 = scmp.ge.s32.totalorder %s376_s5, %s1495_s19  ;;  %p365_p4 = scmp.ge.s32.totalorder %s366_s4, %s1495_s19 }
  0x35   : >> { %s1663_s5 = smov (%p377_p3, %s376_s5), 0  ;;  %368 = sbr.rel (!%p365_p4) target bundleno = 50 (0x32), region = 170 }
  0x36   : >> { %s983_s7 = sshll.u32 %s1663_s5, 3  ;;  %s1370_s30 = smov %s1663_s5  }
  0x37   : >> { %s381_s29 = scalar_lea.vmem %s1498_s26, %s983_s7   ;;  %s382_s28 = scalar_lea.vmem %s360_s27, %s983_s7 [#allocation2]  }
  0x3a PF: > { %385 = sbr.rel (%p200_p0) target bundleno = 82 (0x52), region = 69  ;;  %s387_s11 = ssub.s32 (!%p200_p0), %s1484_s8, %s1490_s10 }
  0x3b   : > { %s391_s18 = sshrl.u32 (!%p200_p0), %s1484_s8, 3  ;;  %s1512_s21 = scalar_lea.vmem (!%p200_p0), %s1482_s6, %s387_s11 }
  0x3c   : > { %s1515_s23 = scalar_lea.vmem (!%p200_p0), %s1486_s9, %s387_s11 [#allocation2]  ;;  %s392_s28 = sshrl.u32 (!%p200_p0), %s391_s18, 5 }
  0x3d   : > { %s1517_s29 = sand.u32 (!%p200_p0), 31, %s391_s18   ;;  %s1019_s19 = sshll.u32 (!%p200_p0), %s392_s28, 12 }
  0x3e   : > { %s543_s26 = sshra.s32 (!%p200_p0), %s1019_s19, 4  ;;  %p991_p6 = scmp.le.s32.totalorder (!%p200_p0), %s1517_s29, 0 }
  0x3f   : > { %s1520_s27 = scalar_lea.vmem %s1482_s6, %s543_s26   ;;  %s547_s30 = scalar_lea.vmem %s1486_s9, %s543_s26 [#allocation2]  }
  0x40   : > { %916 = sbr.rel (%p991_p6) target bundleno = 77 (0x4d), region = 186  ;;  %s1377_s4 = smov (!%p991_p6), %s547_s30  }
  0x41   : > { %s1381_s5 = smov (!%p991_p6), %s1520_s27   ;;  %s1385_s7 = smov (!%p991_p6), 0  }
  0x42   : > { %s1389_s2 = smov (!%p991_p6), 0  }
  0x45 LB: >> { %v559_v2 = vld [vmem:[%s1383_s5] sm:$0xff]  ;;  %v561_v3 = vld [vmem:[%s1383_s5 + $0x18] sm:$0xff]  ;;  %s563_s11 = sadd.s32 1, %s1387_s7  ;;  %s553_s2 = sadd.s32 1, %s1391_s2   ;;  %s1391_s2 = sphi %s1389_s2, %s553_s2   ;;  %s1387_s7 = sphi %s1385_s7, %s1386_s7   ;;  %s1383_s5 = sphi %s1381_s5, %s568_s5   ;;  %s1379_s4 = sphi %s1377_s4, %s569_s4  }
  0x46   : >> { %560 = vst [vmem:[%s1379_s4] sm:$0xff] %v559_v2  ;;  %562 = vst [vmem:[%s1379_s4 + $0x10] sm:$0xff] %v561_v3  ;;  %p564_p7 = scmp.ge.s32.totalorder %s563_s11, %s1517_s29  ;;  %p552_p8 = scmp.ge.s32.totalorder %s553_s2, %s1517_s29 }
  0x48   : >> { %s1665_s11 = smov (%p564_p7, %s563_s11), 0  ;;  %555 = sbr.rel (!%p552_p8) target bundleno = 69 (0x45), region = 192 }
  0x49   : >> { %s992_s18 = sshll.u32 %s1665_s11, 3  ;;  %s1386_s7 = smov %s1665_s11  }
  0x4a   : >> { %s568_s5 = scalar_lea.vmem %s1520_s27, %s992_s18   ;;  %s569_s4 = scalar_lea.vmem %s547_s30, %s992_s18 [#allocation2]  }
  0x4d PF: > { %s1393_s28 = smov 1  }
  0x4e   : > { %s570_s19 = sshll.u32 %s1393_s28, %s1490_s10 }
  0x4f   : > { %s994_s26 = sadd.s32 4294967295, %s570_s19 }
  0x50   : > { %v580_v4 = vld [vmem:[%s1512_s21] sm:%s994_s26]  ;;  %v582_v5 = vld [vmem:[%s1512_s21 + $0x18] sm:%s994_s26] }
  0x51   : > { %581 = vst [vmem:[%s1515_s23] sm:%s994_s26] %v580_v4  ;;  %583 = vst [vmem:[%s1515_s23 + $0x10] sm:%s994_s26] %v582_v5 }
  0x52 PF: > { %p995_p11 = scmp.ge.u32.totalorder %s1484_s8, 8 }
  0x53   : > { %s1394_s2 = smov (!%p995_p11), 1  }
  0x54   : > { %184 = sbr.rel (%p995_p11) target bundleno = 91 (0x5b), region = 40  ;;  %s185_s29 = sshll.u32 (!%p995_p11), %s1394_s2, %s1484_s8 }
  0x55   : > { %s996_s27 = sadd.s32 (!%p995_p11), 4294967295, %s185_s29 }
  0x59   : > { %v195_v6 = vld [vmem:[%s1482_s6] sm:%s996_s27]  ;;  %v197_v7 = vld [vmem:[%s1482_s6 + $0x18] sm:%s996_s27] }
  0x5a   : > { %196 = vst [vmem:[%s1486_s9] sm:%s996_s27] %v195_v6  ;;  %198 = vst [vmem:[%s1486_s9 + $0x10] sm:%s996_s27] %v197_v7 }
  0x5b PF: > { %p997_p12 = scmp.ge.s32.totalorder %s1359_s17, 1  ;;  %p586_p13 = scmp.lt.s32.totalorder %s1359_s17, 3 }
  0x5d   : > { %p587_p0 = pnand %p997_p12, %p586_p13 }
  0x5e   : > { %s593_s10 = sand.u32 (!%p587_p0), 1, %s1343_s13  }
  0x5f   : > { %590 = sbr.rel (%p587_p0) target bundleno = 341 (0x155), region = 94  ;;  %s1544_s8 = sshll.u32 (!%p587_p0), %s593_s10, 5 }
  0x60   : > { %s595_s26 = scalar_lea.vmem (!%p587_p0), [#allocation2], %s1544_s8  ;;  %s620_s9 = scalar_lea.vmem (!%p587_p0), [#allocation3], %s1544_s8 }
  0x61   : > { %s1574_s21 = scalar_lea.sflag (!%p587_p0), [#allocation4], %s593_s10 }
  0x64   : > { %v1395_v8 = vmov 0   ;;  %v637_v9 = vld [vmem:[%s1646_s1] sm:$0xff]  ;;  %v651_v10 = vld [vmem:[%s1645_s0 + $0x10] sm:$0xff]  ;;  %v638_v12 = vld [vmem:[%s1646_s1 + $0x8] sm:$0xff]  ;;  %vm673_vm0 = vcmask 130048   ;;  %s1007_s23 = sshll.u32 (%p1458_p5), %s1351_s15, 1 }
  0x65   : > { %712 = vmatprep.mubr.bf16.mxu0 %v1395_v8  ;;  %722 = vmatprep.mubr.bf16.mxu1 %v1395_v8  ;;  %v649_v11 = vld [vmem:[%s1645_s0] sm:$0xff]  ;;  %v639_v13 = vld [vmem:[%s1646_s1 + $0x10] sm:$0xff]  ;;  %v640_v14 = vld [vmem:[%s1646_s1 + $0x18] sm:$0xff]  ;;  %v641_v23 = vpack.c.bf16 %v638_v12, %v637_v9  ;;  %s770_s8 = ssub.s32 (%p1458_p5), 3, %s1007_s23 }
  0x66   : > { %1218 = vset.pattern.permute.xlu1 %v1395_v8  ;;  %1217 = vset.pattern.permute.xlu0 %v1395_v8  ;;  %v644_v15 = vld [vmem:[%s595_s26 + $0x8] sm:$0xff]  ;;  %v646_v16 = vld [vmem:[%s595_s26 + $0x18] sm:$0xff]  ;;  %v643_v17 = vld [vmem:[%s595_s26] sm:$0xff]  ;;  %v642_v24 = vpack.c.bf16 %v640_v14, %v639_v13  ;;  %p771_p1 = scmp.lt.s32.totalorder (%p1458_p5), %s770_s8, 2 }
  0x67   : > { %665 = vperm.xlu1 %1218, %v651_v10   ;;  %655 = vperm.xlu0 %1217, %v649_v11   ;;  %v648_v18 = vpack.c.bf16 %v646_v16, %v644_v15  ;;  %v645_v19 = vld [vmem:[%s595_s26 + $0x10] sm:$0xff]  ;;  %v652_v21 = vld [vmem:[%s1645_s0 + $0x18] sm:$0xff]  ;;  %v650_v22 = vld [vmem:[%s1645_s0 + $0x8] sm:$0xff] }
  0x68   : > { %v647_v20 = vpack.c.bf16 %v645_v19, %v643_v17 }
  0x69   : > { %694 = vmatprep.subr.bf16.mxu0 %v648_v18  ;;  %1028 = vmatprep.subr.bf16.mxu1 %v648_v18 }
  0x6a   : > { %695 = vmatpush1.bf16.msra.mxu0 %v647_v20  ;;  %1029 = vmatpush1.bf16.msra.mxu1 %v647_v20 }
  0x6b   : > { %670 = vperm.xlu1 %1218, %v652_v21   ;;  %660 = vperm.xlu0 %1217, %v650_v22  }
  0x6d   : > { %1000 = vmatmul.mubr.msk.bf16.vlgmr.msra.gmra.mxu0 %vm673_vm0, %v641_v23  ;;  %1001 = vmatmul.mubr.msk.bf16.vlgmr.msra.gmra.mxu1 %vm673_vm0, %v642_v24 }
  0xe2   : > { %v666_v25 = vpop.permute.xlu1 %665  ;;  %v656_v26 = vpop.permute.xlu0 %655 }
  0xe6   : > { %v671_v37 = vpop.permute.xlu1 %670  ;;  %v661_v38 = vpop.permute.xlu0 %660 }
 0x12d   : > { %v714_v27 = vpop.f32.mrf.mxu0  ;;  %v724_v28 = vpop.f32.mrf.mxu1 }
 0x12e   : > { %v715_v31 = vadd.f32 %v714_v27, %v656_v26  ;;  %v725_v32 = vadd.f32 %v724_v28, %v666_v25 }
 0x12f   : > { %v716_v29 = vpop.f32.mrf.mxu0  ;;  %v726_v30 = vpop.f32.mrf.mxu1 }
 0x130   : > { %v717_v33 = vadd.f32 %v716_v29, %v656_v26  ;;  %v727_v34 = vadd.f32 %v726_v30, %v666_v25 }
 0x131   : > { %v718_v35 = vpop.f32.mrf.mxu0  ;;  %v728_v36 = vpop.f32.mrf.mxu1 }
 0x132   : > { %v1021_v39 = vpack.c.bf16 %v717_v33, %v715_v31  ;;  %v1023_v40 = vpack.c.bf16 %v727_v34, %v725_v32  ;;  %v719_v43 = vadd.f32 %v718_v35, %v661_v38  ;;  %v729_v44 = vadd.f32 %v728_v36, %v671_v37 }
 0x133   : > { %v720_v41 = vpop.f32.mrf.mxu0  ;;  %v730_v42 = vpop.f32.mrf.mxu1 }
 0x134   : > { %757 = vst [vmem:[%s620_s9] sm:$0xff] %v1021_v39  ;;  %759 = vst [vmem:[%s620_s9 + $0x10] sm:$0xff] %v1023_v40  ;;  %v721_v45 = vadd.f32 %v720_v41, %v661_v38  ;;  %v731_v46 = vadd.f32 %v730_v42, %v671_v37  ;;  %768 = sbr.rel (!%p1458_p5) target bundleno = 341 (0x155), region = 102 }
 0x136   : > { %v1022_v47 = vpack.c.bf16 %v721_v45, %v719_v43  ;;  %v1024_v48 = vpack.c.bf16 %v731_v46, %v729_v44 }
 0x138   : > { %758 = vst [vmem:[%s620_s9 + $0x8] sm:$0xff] %v1022_v47  ;;  %760 = vst [vmem:[%s620_s9 + $0x18] sm:$0xff] %v1024_v48 }
 0x139   : > { %s1667_s8 = smov (!%p771_p1, %s770_s8), 2 }
 0x13a   : > { %s1582_s30 = sshll.u32 %s1667_s8, 8 }
 0x13b   : > { %s775_s4 = ssub.s32 512, %s1582_s30 }
 0x13c   : > { %776 = vsyncadd %s1574_s21, %s775_s4  ;;  %p1009_p2 = scmp.ne.s32.totalorder %s1582_s30, 0  ;;  %s1025_s22 = sshll.u32 %s1351_s15, 7 }
 0x13d   : > { %s1591_s7 = scalar_lea.hbm %s1648_s3, %s1025_s22  ;;  %s1011_s11 = sshll.u32 %s1667_s8, 2 }
 0x13e   : > { %s784_s18 = sshll.u32 %s620_s9, 4  ;;  %s1396_s19 = smov [#allocation3]   ;;  %s1594_s18 = int_to_ptr.vmem [resolvable:$true] %s784_s18 }
 0x13f   : > { %s1219_s28 = scalar_lea.vmem %s1594_s18, %s1582_s30  ;;  %s1223_s26 = sshll.u32 %s1396_s19, 4  ;;  %s1224_s26 = int_to_ptr.vmem [resolvable:$false] %s1223_s26 }
 0x140   : > { %p1220_p5 = scmp.ne.s32.totalorder %s1594_s18, %s1219_s28  ;;  %s1225_s15 = scalar_lea.vmem %s1224_s26, 1024 }
 0x141   : > { %p1226_p6 = scmp.lt.s32.totalorder %s1594_s18, %s1224_s26  ;;  %p1227_p7 = scmp.lt.s32.totalorder %s1225_s15, %s1219_s28 }
 0x142   : > { %p1221_p3 = pnand %p1220_p5, %p1009_p2 }
 0x143   : > { %p1228_p8 = por %p1227_p7, %p1226_p6 }
 0x144   : > { %p1222_p4 = pneg %p1221_p3 }
 0x146   : > { %p1229_p11 = pnand %p1228_p8, %p1222_p4 }
 0x148   : > { %1232 = shalt.err (!%p1229_p11)
}
 0x149   : > { %s1233_s2 = scalar_lea.hbm %s1591_s7, %s1582_s30  ;;  %s1237_s6 = scalar_lea.hbm %s1648_s3, 768 }
 0x14a   : > { %p1234_p12 = scmp.ne.s32.totalorder %s1591_s7, %s1233_s2  ;;  %p1238_p1 = scmp.lt.s32.totalorder %s1591_s7, %s1648_s3 }
 0x14b   : > { %p1239_p5 = scmp.lt.s32.totalorder %s1237_s6, %s1233_s2 }
 0x14c   : > { %p1235_p13 = pnand %p1234_p12, %p1009_p2 }
 0x14d   : > { %p1240_p3 = por %p1239_p5, %p1238_p1 }
 0x14e   : > { %p1236_p0 = pneg %p1235_p13 }
 0x150   : > { %p1241_p4 = pnand %p1240_p3, %p1236_p0 }
 0x152   : > { %1244 = shalt.err (!%p1241_p4)
}
 0x153   : > { %s1397_s4 = smov 128   ;;  %s1398_s22 = smov 192  }
 0x154   : > { %790 = dma.vmem_to_hbm [thread:$0]  (%p1009_p2), %s1594_s18, %s1582_s30, %s1591_s7, %s1574_s21, %s1397_s4, %s1398_s22, %s1011_s11  }
 0x155 PF: > { %s799_s10 = sand.u32 1, %s1339_s12   ;;  %p1032_p6 = pnand %p967_p10, %p1469_p9 }
 0x156   : > { %s800_s5 = scalar_lea.sflag [#allocation4], %s799_s10 }
 0x157   : > { %p1033_p7 = pneg %p1032_p6 }
 0x159   : > { %1334 = dma.done.wait (%p1033_p7), %s800_s5, 512  }
 0x15a   : > { %1336 = vsyncadd (%p1033_p7), %s800_s5, 4294966784  ;;  %s16_s17 = sadd.s32 1, %s1359_s17   ;;  %s1653_s12 = smov %s1343_s13 }
 0x15b   : > { %p13_p8 = scmp.ge.s32.totalorder %s16_s17, 4   ;;  %s1654_s13 = smov %s1347_s14 }
 0x15c   : > { %s1655_s14 = smov %s1467_s24  ;;  %s1656_s15 = smov %s1355_s16 }
 0x15d   : > { %s1657_s16 = smov %s1659_s20  ;;  %15 = sbr.rel (!%p13_p8) target bundleno = 6 (0x6), region = 203 }
 0x162   :  { %805 = vsyncpa [#allocation4], 1 }
 0x163   :  { %807 = vsyncpa [#allocation4 + $0x1], 1 }

</bundles_post_ra>
